<compile_context>
chip_gen: v7x
topology: tpu7x:2x2x1
jax: 0.10.0
libtpu: 0.0.40
codegen_flags: <defaults>
</compile_context>

<pallas_src>
import jax
import jax.numpy as jnp
from jax.experimental import pallas as pl
from jax.experimental.pallas import tpu as pltpu


_LANE = 512           # lane-axis width: multiple of 128 -> unmasked vst, full vreg
_MAX_TILE_ROWS = 1024  # sublane rows per grid step (multiple of 8); ~2 MiB f32 tile


def _sigma_kernel(sigma_ref, x_ref, o_ref):
    # sigma_ref: (1,) scalar in SMEM. x_ref / o_ref: (tile_rows, _LANE) VMEM tiles.
    s = sigma_ref[0]
    s2 = s * s                      # hoisted scalar-unit multiply (once per tile)
    o_ref[...] = s2 * x_ref[...]    # single VPU vmul per vreg


def _round_up(a, b):
    return (a + b - 1) // b * b


def sigma_forward(x, sigma, *, min_pallas_elems=0):
    """Computes sigma**2 * x with a lane-dense, tiled Pallas TPU kernel.

    Args:
      x: array of any shape (NCHW here), float32.
      sigma: scalar parameter; shape (1,) or 0-d (reshaped internally).
      min_pallas_elems: below this element count, fall back to plain XLA
        (kernel launch overhead dominates tiny elementwise ops). Default 0 so
        the demo always exercises the kernel.
    Returns:
      Array of the same shape/dtype as x.
    """
    orig_shape = x.shape
    orig_dtype = x.dtype
    sigma = jnp.asarray(sigma, orig_dtype).reshape((1,))

    total = int(x.size)
    if total == 0:
        return x
    if total < min_pallas_elems:
        # Tiny input: let XLA fuse the scalar multiply into neighboring ops.
        return (sigma[0] * sigma[0]) * x

    # Flatten to a lane-dense (rows_padded, _LANE) slab; zero-pad the tail so
    # the grid divides evenly (padding sliced off afterwards).
    rows = _round_up(total, _LANE) // _LANE
    if rows <= _MAX_TILE_ROWS:
        tile_rows = _round_up(rows, 8)      # full-extent block, 8-aligned sublanes
        rows_padded = tile_rows
    else:
        tile_rows = _MAX_TILE_ROWS
        rows_padded = _round_up(rows, tile_rows)
    padded_total = rows_padded * _LANE

    x_flat = x.reshape(-1)
    if padded_total != total:
        x_flat = jnp.pad(x_flat, (0, padded_total - total))
    x2d = x_flat.reshape(rows_padded, _LANE)

    grid = (rows_padded // tile_rows,)
    tile_bytes = tile_rows * _LANE * x2d.dtype.itemsize
    # Double-buffered input + output tiles plus headroom; well under v7x's
    # 64 MiB physical VMEM and fine on v6e/v5e.
    vmem_limit = max(4 * tile_bytes + (2 << 20), 16 << 20)

    out2d = pl.pallas_call(
        _sigma_kernel,
        out_shape=jax.ShapeDtypeStruct((rows_padded, _LANE), x2d.dtype),
        grid=grid,
        in_specs=[
            pl.BlockSpec(memory_space=pltpu.MemorySpace.SMEM),    # sigma scalar
            pl.BlockSpec((tile_rows, _LANE), lambda i: (i, 0)),   # x tile
        ],
        out_specs=pl.BlockSpec((tile_rows, _LANE), lambda i: (i, 0)),
        compiler_params=pltpu.CompilerParams(
            dimension_semantics=("parallel",),
            vmem_limit_bytes=vmem_limit,
        ),
    )(sigma, x2d)

    out_flat = out2d.reshape(-1)
    if padded_total != total:
        out_flat = out_flat[:total]
    return out_flat.reshape(orig_shape)


if __name__ == "__main__":
    key = jax.random.PRNGKey(0)
    # Small NCHW input consistent with a generic forward: batch=2, C=4, 16x16.
    x = jax.random.normal(key, (2, 4, 16, 16), dtype=jnp.float32)

    # Parameter init matches nn.Parameter(torch.ones(1)).
    sigma = jnp.ones((1,), dtype=jnp.float32)

    out = sigma_forward(x, sigma)
    out = jax.block_until_ready(out)

    # Reference check (pure JAX).
    ref = (sigma[0] ** 2) * x
    assert out.shape == x.shape and out.dtype == x.dtype
    assert jnp.allclose(out, ref, atol=1e-6, rtol=1e-6)

    print("KERNEL_OK")
</pallas_src>

<mosaic_0001>
module attributes {stable_mosaic.version = 11 : i64} {
  func.func @_sigma_kernel(%arg0: i32, %arg1: memref<1xf32, #tpu.memory_space<smem>>, %arg2: memref<8x512xf32, #tpu.memory_space<vmem>>, %arg3: memref<8x512xf32, #tpu.memory_space<vmem>>) attributes {dimension_semantics = [#tpu.dimension_semantics<parallel>], iteration_bounds = array<i64: 1>, scalar_prefetch = 0 : i64, scratch_operands = 0 : i64, tpu.core_type = #tpu.core_type<tc>, window_params = [{transform_indices = @transform_0, window_bounds = array<i64: 1>}, {transform_indices = @transform_1, window_bounds = array<i64: 8, 512>}, {transform_indices = @transform_2, window_bounds = array<i64: 8, 512>}]} {
    %c0 = arith.constant 0 : index
    %0 = memref.load %arg1[%c0] : memref<1xf32, #tpu.memory_space<smem>>
    %1 = arith.mulf %0, %0 : f32
    %c0_0 = arith.constant 0 : index
    %c0_1 = arith.constant 0 : index
    %2 = vector.load %arg2[%c0_0, %c0_1] : memref<8x512xf32, #tpu.memory_space<vmem>>, vector<8x512xf32>
    %3 = vector.broadcast %1 : f32 to vector<8x512xf32>
    %4 = arith.mulf %3, %2 : vector<8x512xf32>
    %c0_2 = arith.constant 0 : index
    %c0_3 = arith.constant 0 : index
    %5 = vector.load %arg3[%c0_2, %c0_3] : memref<8x512xf32, #tpu.memory_space<vmem>>, vector<8x512xf32>
    tpu.vector_store %arg3[%c0_2, %c0_3], %4 {strides = array<i32>} : memref<8x512xf32, #tpu.memory_space<vmem>>, vector<8x512xf32>,
    return
  }
  func.func @transform_0(%arg0: i32) -> i32 {
    %c0_i32 = arith.constant 0 : i32
    %c0_i32_0 = arith.constant 0 : i32
    return %c0_i32 : i32
  }
  func.func @transform_1(%arg0: i32) -> (i32, i32) {
    %c0_i32 = arith.constant 0 : i32
    %c0_i32_0 = arith.constant 0 : i32
    return %arg0, %c0_i32 : i32, i32
  }
  func.func @transform_2(%arg0: i32) -> (i32, i32) {
    %c0_i32 = arith.constant 0 : i32
    %c0_i32_0 = arith.constant 0 : i32
    return %arg0, %c0_i32 : i32, i32
  }
}

</mosaic_0001>

<bundles_post_ra>
// kernel: tpu_custom_call.1
= control target key start
LH: loop header
LB: loop body
LE: loop exit
PB: predicated region body
PF: predicated region fallthrough
CT: control target
= control target key end

     0   :  { %8 = vsyncpa [#allocation4], 0  ;;  %s150_s0 = inlined_call_operand.<no memory space> [shape: f32[1], index: 0, kind: input, shape index: {}]   ;;  %s151_s1 = inlined_call_operand.hbm [shape: f32[8,512], index: 1, kind: input, shape index: {}]   ;;  %s152_s2 = inlined_call_operand.hbm [shape: f32[8,512], index: 2, kind: output, shape index: {}]  }
   0x1   :  { %9 = vsyncpa [#allocation5], 0  ;;  %s105_s9 = smov [#allocation3]   ;;  %s57_s13 = scalar_lea.hbm %s151_s1, 512 }
   0x2   :  { %s18_s10 = sshll.u32 %s105_s9, 4  ;;  %p58_p0 = scmp.ne.s32.totalorder %s151_s1, %s57_s13  ;;  %s19_s10 = int_to_ptr.vmem [resolvable:$true] %s18_s10 }
   0x3   :  { %p61_p1 = scmp.lt.u32.totalorder %s57_s13, %s151_s1 }
   0x5   :  { %p63_p2 = pnand %p61_p1, %p58_p0 }
   0x7   :  { %66 = shalt.err (!%p63_p2)
}
   0x8   :  { %s67_s18 = scalar_lea.vmem %s19_s10, 512  ;;  %p72_p4 = scmp.lt.s32.totalorder %s19_s10, %s19_s10 }
   0x9   :  { %p68_p3 = scmp.ne.s32.totalorder %s19_s10, %s67_s18  ;;  %p73_p5 = scmp.lt.s32.totalorder %s67_s18, %s67_s18 }
   0xb   :  { %p74_p6 = por %p73_p5, %p72_p4 }
   0xd   :  { %p75_p7 = pnand %p74_p6, %p68_p3 }
   0xf   :  { %78 = shalt.err (!%p75_p7)
}
  0x10   :  { %21 = dma.hbm_to_vmem [thread:$0]  %s151_s1, 512, %s19_s10, [#allocation4]  }
  0x11   :  { %101 = dma.done.wait [#allocation4], 512  }
  0x12   :  { %102 = vsyncadd [#allocation4], 4294966784  ;;  %s26_s23 = smul.f32 %s150_s0, %s150_s0  ;;  %s106_s24 = smov [#allocation6]   ;;  %v27_v1 = vld [vmem:[#allocation3] sm:$0xff]  ;;  %v28_v2 = vld [vmem:[#allocation3 + $0x8] sm:$0xff] }
  0x13   :  { %s46_s25 = sshll.u32 %s106_s24, 4  ;;  %v29_v3 = vld [vmem:[#allocation3 + $0x10] sm:$0xff]  ;;  %v30_v7 = vld [vmem:[#allocation3 + $0x18] sm:$0xff]  ;;  %s47_s25 = int_to_ptr.vmem [resolvable:$true] %s46_s25 }
  0x14   :  { %v31_v0 = vstv %s26_s23  ;;  %s79_s1 = scalar_lea.vmem %s47_s25, 512  ;;  %p84_p9 = scmp.lt.s32.totalorder %s47_s25, %s47_s25 }
  0x15   :  { %v32_v4 = vmul.f32 %v31_v0, %v27_v1  ;;  %v33_v5 = vmul.f32 %v31_v0, %v28_v2  ;;  %v34_v6 = vmul.f32 %v31_v0, %v29_v3  ;;  %v35_v8 = vmul.f32 %v31_v0, %v30_v7  ;;  %p80_p8 = scmp.ne.s32.totalorder %s47_s25, %s79_s1  ;;  %p85_p10 = scmp.lt.s32.totalorder %s79_s1, %s79_s1 }
  0x17   :  { %36 = vst [vmem:[#allocation6] sm:$0xff] %v32_v4  ;;  %37 = vst [vmem:[#allocation6 + $0x8] sm:$0xff] %v33_v5  ;;  %p86_p11 = por %p85_p10, %p84_p9 }
  0x18   :  { %38 = vst [vmem:[#allocation6 + $0x10] sm:$0xff] %v34_v6  ;;  %39 = vst [vmem:[#allocation6 + $0x18] sm:$0xff] %v35_v8 }
  0x19   :  { %p87_p12 = pnand %p86_p11, %p80_p8 }
  0x1b   :  { %90 = shalt.err (!%p87_p12)
}
  0x1c   :  { %s91_s27 = scalar_lea.hbm %s152_s2, 512 }
  0x1d   :  { %p92_p13 = scmp.ne.s32.totalorder %s152_s2, %s91_s27  ;;  %p95_p0 = scmp.lt.u32.totalorder %s91_s27, %s152_s2 }
  0x1f   :  { %p97_p1 = pnand %p95_p0, %p92_p13 }
  0x21   :  { %100 = shalt.err (!%p97_p1)
}
  0x22   :  { %49 = dma.vmem_to_hbm [thread:$0]  %s47_s25, 512, %s152_s2, [#allocation5]  }
  0x23   :  { %103 = dma.done.wait [#allocation5], 512  }
  0x24   :  { %104 = vsyncadd [#allocation5], 4294966784 }
  0x25   :  { %53 = vsyncpa [#allocation4], 1 }
  0x26   :  { %54 = vsyncpa [#allocation5], 1 }

</bundles_post_ra>
